<compile_context>
chip_gen: v7x
topology: tpu7x:2x2x1
jax: 0.10.0
libtpu: 0.0.40
codegen_flags: <defaults>
</compile_context>

<pallas_src>
import functools

import jax
import jax.numpy as jnp
from jax.experimental import pallas as pl
from jax.experimental.pallas import tpu as pltpu


# ---------------------------------------------------------------------------
# Best-effort hardware queries (conservative fallbacks if they fail).
# ---------------------------------------------------------------------------
def _tpu_vmem_capacity():
    """Per-core VMEM capacity in bytes, or None if the query fails."""
    try:
        v = getattr(pltpu.get_tpu_info(), "vmem_capacity_bytes", None)
        return int(v) if v else None
    except Exception:
        return None


def _tpu_num_tensorcores(vmem_capacity):
    """Best-effort TensorCores-per-chip (only used for grid-step targeting)."""
    try:
        info = pltpu.get_tpu_info()
        for attr in ("tensorcores_per_chip", "num_tensorcores", "num_cores"):
            v = getattr(info, attr, None)
            if isinstance(v, int) and 0 < v <= 4:
                return v
    except Exception:
        pass
    # Heuristic: 64 MiB per-core VMEM is the v7x signature (2 TCs per chip).
    if vmem_capacity is not None and vmem_capacity <= (64 << 20):
        return 2
    return 1


# ---------------------------------------------------------------------------
# Single-pass kernel: one (tile_rows, H*W) block per grid step.
# ---------------------------------------------------------------------------
def _simam_kernel(x_ref, o_ref, *, inv_n, inv_hw, e_lambda):
    # x_ref / o_ref: (tile_rows, H*W) block in VMEM; each row is one (b, c)
    # plane. All math is strictly per-row, so the masked overhanging last
    # row-block is safe (garbage rows never touch valid rows).
    x = x_ref[...]
    xf = x.astype(jnp.float32)

    # Keep the PyTorch ordering (mean -> subtract -> square -> sum); the fused
    # sum / sum-of-squares form risks cancellation for low-variance planes.
    mu = jnp.sum(xf, axis=-1, keepdims=True) * inv_hw
    d = xf - mu
    d = d * d
    s = jnp.sum(d, axis=-1, keepdims=True)

    # One exact per-row reciprocal; s * (1/n) instead of a divide.
    inv = pl.reciprocal(4.0 * (s * inv_n + e_lambda), approx=False)
    y = d * inv + 0.5

    # Final multiply + store in the input dtype (bf16-native epilogue on
    # v6e/v7x; identical math for f32 inputs).
    o_ref[...] = (x * jax.nn.sigmoid(y).astype(x.dtype)).astype(o_ref.dtype)


# ---------------------------------------------------------------------------
# Chunked two-pass path for planes too large for one VMEM slab.
# Pass 1 accumulates sum(x) and sum(x^2) per row; pass 2 applies the gate.
# (Slight cancellation risk vs. the exact ordering; only engaged for very
# large planes where a single-block pass cannot compile.)
# ---------------------------------------------------------------------------
def _simam_stats_kernel(x_ref, sum_ref, sumsq_ref, *, hw, tile_hw):
    j = pl.program_id(1)

    @pl.when(j == 0)
    def _():
        sum_ref[...] = jnp.zeros_like(sum_ref)
        sumsq_ref[...] = jnp.zeros_like(sumsq_ref)

    x = x_ref[...].astype(jnp.float32)
    if hw % tile_hw:  # static: mask columns past the true plane width
        col = j * tile_hw + jax.lax.broadcasted_iota(jnp.int32, x.shape, 1)
        x = jnp.where(col < hw, x, 0.0)
    sum_ref[...] += jnp.sum(x, axis=-1, keepdims=True)
    sumsq_ref[...] += jnp.sum(x * x, axis=-1, keepdims=True)


def _simam_apply_kernel(x_ref, mu_ref, inv_ref, o_ref):
    x = x_ref[...]
    d = x.astype(jnp.float32) - mu_ref[...]
    y = d * d * inv_ref[...] + 0.5
    o_ref[...] = (x * jax.nn.sigmoid(y).astype(x.dtype)).astype(o_ref.dtype)


def _simam_chunked(x2d, rows, hw, n, e_lambda, tile_rows, tile_hw, vmem_limit):
    grid = (pl.cdiv(rows, tile_rows), pl.cdiv(hw, tile_hw))

    sums, sumsqs = pl.pallas_call(
        functools.partial(_simam_stats_kernel, hw=hw, tile_hw=tile_hw),
        out_shape=(jax.ShapeDtypeStruct((rows, 1), jnp.float32),
                   jax.ShapeDtypeStruct((rows, 1), jnp.float32)),
        grid_spec=pltpu.PrefetchScalarGridSpec(
            num_scalar_prefetch=0,
            grid=grid,
            in_specs=[pl.BlockSpec((tile_rows, tile_hw), lambda i, j: (i, j))],
            out_specs=[pl.BlockSpec((tile_rows, 1), lambda i, j: (i, 0)),
                       pl.BlockSpec((tile_rows, 1), lambda i, j: (i, 0))]),
        compiler_params=pltpu.CompilerParams(
            dimension_semantics=("parallel", "arbitrary"),
            vmem_limit_bytes=vmem_limit),
    )(x2d)

    # Tiny per-row finalization in plain JAX (rows x 1).
    mu = sums / hw
    s = jnp.maximum(sumsqs - hw * mu * mu, 0.0)  # sum of (x - mu)^2
    inv = 1.0 / (4.0 * (s / n + e_lambda))

    out2d = pl.pallas_call(
        _simam_apply_kernel,
        out_shape=jax.ShapeDtypeStruct((rows, hw), x2d.dtype),
        grid_spec=pltpu.PrefetchScalarGridSpec(
            num_scalar_prefetch=0,
            grid=grid,
            in_specs=[pl.BlockSpec((tile_rows, tile_hw), lambda i, j: (i, j)),
                      pl.BlockSpec((tile_rows, 1), lambda i, j: (i, 0)),
                      pl.BlockSpec((tile_rows, 1), lambda i, j: (i, 0))],
            out_specs=pl.BlockSpec((tile_rows, tile_hw), lambda i, j: (i, j))),
        compiler_params=pltpu.CompilerParams(
            dimension_semantics=("parallel", "parallel"),
            vmem_limit_bytes=vmem_limit),
    )(x2d, mu, inv)
    return out2d


# ---------------------------------------------------------------------------
# Tile choosers.
# ---------------------------------------------------------------------------
def _choose_tile_rows(rows, hw, itemsize, *, budget, num_cores):
    """Largest row-tile that fits the per-step VMEM budget (lane padding aware)."""
    sublane = max(8, 32 // itemsize)          # f32: 8, bf16: 16, int8/fp8: 32
    hw_pad = pl.cdiv(hw, 128) * 128           # (8,128) lane padding of last dim
    # Double-buffered in + out blocks (2*2*itemsize) plus ~4 f32 temps, all on
    # the padded lane width.
    bytes_per_row = hw_pad * (4 * itemsize + 4 * 4)
    t = max(budget // max(bytes_per_row, 1), sublane)
    t = min(t, 1024)  # >1024 rows adds VMEM pressure without extra bandwidth
    # Step targeting: >=2 steps per TensorCore so each core pipelines; on
    # single-core chips keep a ~512-row floor (smaller blocks fall off the
    # measured HBM roofline for no benefit).
    target_steps = 2 * num_cores
    floor = sublane if num_cores > 1 else 512
    if rows >= target_steps * sublane:
        per_step = max(pl.cdiv(rows, target_steps), floor)
        t = min(t, per_step)
    t = max((t // sublane) * sublane, sublane)
    if t >= rows:
        return rows  # one full-extent block (always a legal block dim)
    return t


def _choose_chunked_tiles(rows, hw, itemsize, budget):
    sublane = max(8, 32 // itemsize)
    hw_pad = pl.cdiv(hw, 128) * 128
    if rows <= sublane:
        tr = rows
    else:
        tr = min((rows // sublane) * sublane, 8 * sublane)
    per_col_bytes = max(tr, sublane) * (4 * itemsize + 4 * 4)
    th = max((budget // per_col_bytes) // 128 * 128, 128)
    th = min(th, hw_pad)
    if th >= hw:
        th = hw
    return tr, th


# ---------------------------------------------------------------------------
# Public wrapper.
# ---------------------------------------------------------------------------
def simam(x, e_lambda=1e-4, tile_rows=None, hw_chunk=None):
    """SimAM forward. x: (B, C, H, W). Returns (B, C, H, W), same dtype.

    Precondition: H*W > 1 (H*W == 1 gives n = 0 -> inf/NaN, matching the
    PyTorch module's degenerate behavior).
    """
    b, c, h, w = x.shape
    hw = h * w
    n = hw - 1
    rows = b * c
    itemsize = x.dtype.itemsize
    x2d = x.reshape(rows, hw)

    # Generation-aware VMEM limits: 96/48 MiB limit and 48/24 MiB per-step
    # budget on 128/64 MiB chips.
    cap = _tpu_vmem_capacity()                 # None if query failed
    capacity = cap if cap else (64 << 20)      # conservative default
    vmem_limit = min((3 * capacity) // 4, 96 << 20)
    budget = vmem_limit // 2
    num_cores = _tpu_num_tensorcores(cap)

    sublane = max(8, 32 // itemsize)
    hw_pad = pl.cdiv(hw, 128) * 128
    min_block_bytes = sublane * hw_pad * (4 * itemsize + 4 * 4)
    needs_split = (hw_chunk is not None) or (min_block_bytes > budget)

    if not needs_split:
        tr = tile_rows if tile_rows is not None else _choose_tile_rows(
            rows, hw, itemsize, budget=budget, num_cores=num_cores)
        kernel = functools.partial(
            _simam_kernel, inv_n=1.0 / float(n), inv_hw=1.0 / float(hw),
            e_lambda=float(e_lambda))
        out2d = pl.pallas_call(
            kernel,
            out_shape=jax.ShapeDtypeStruct((rows, hw), x.dtype),
            grid_spec=pltpu.PrefetchScalarGridSpec(
                num_scalar_prefetch=0,
                grid=(pl.cdiv(rows, tr),),
                in_specs=[pl.BlockSpec((tr, hw), lambda i: (i, 0))],
                out_specs=pl.BlockSpec((tr, hw), lambda i: (i, 0))),
            compiler_params=pltpu.CompilerParams(
                dimension_semantics=("parallel",),
                vmem_limit_bytes=vmem_limit),
        )(x2d)
    else:
        tr, th = _choose_chunked_tiles(rows, hw, itemsize, budget)
        if hw_chunk is not None:
            th = hw_chunk
        if tile_rows is not None:
            tr = tile_rows
        out2d = _simam_chunked(x2d, rows, hw, float(n), float(e_lambda),
                               tr, th, vmem_limit)

    return out2d.reshape(b, c, h, w)


def simam_reference(x, e_lambda=1e-4):
    """Pure-JAX reference mirroring the PyTorch module exactly."""
    b, c, h, w = x.shape
    n = w * h - 1
    mu = jnp.mean(x, axis=(2, 3), keepdims=True)
    d = (x - mu) ** 2
    y = d / (4.0 * (jnp.sum(d, axis=(2, 3), keepdims=True) / n + e_lambda)) + 0.5
    return x * jax.nn.sigmoid(y)


if __name__ == "__main__":
    key = jax.random.PRNGKey(0)

    # 1) Primary: small NCHW tensor, auto-chosen tile, single-pass path.
    B, C, H, W = 2, 4, 16, 16
    x = jax.random.normal(key, (B, C, H, W), dtype=jnp.float32)
    out = jax.block_until_ready(simam(x))
    ref = simam_reference(x)
    assert out.shape == (B, C, H, W) and out.dtype == x.dtype
    assert jnp.allclose(out, ref, atol=1e-5, rtol=1e-5), "mismatch (primary)"

    # 2) Rows not a multiple of the tile and a non-128-multiple plane (7x7):
    #    exercises the masked overhanging last row-block.
    x2 = jax.random.normal(jax.random.PRNGKey(1), (3, 5, 7, 7), dtype=jnp.float32)
    out2 = jax.block_until_ready(simam(x2, tile_rows=8))
    ref2 = simam_reference(x2)
    assert jnp.allclose(out2, ref2, atol=1e-5, rtol=1e-5), "mismatch (row overhang)"

    # 3) Forced chunked (two-pass) path with an overhanging hw chunk.
    x3 = jax.random.normal(jax.random.PRNGKey(2), (2, 4, 16, 10), dtype=jnp.float32)
    out3 = jax.block_until_ready(simam(x3, hw_chunk=128))
    ref3 = simam_reference(x3)
    assert jnp.allclose(out3, ref3, atol=1e-5, rtol=1e-5), "mismatch (chunked path)"

    # 4) bf16 input: bf16-native epilogue (stats still accumulated in f32).
    x4 = jax.random.normal(jax.random.PRNGKey(3), (2, 4, 16, 16), dtype=jnp.bfloat16)
    out4 = jax.block_until_ready(simam(x4))
    ref4 = simam_reference(x4.astype(jnp.float32))
    assert out4.dtype == jnp.bfloat16
    assert jnp.allclose(out4.astype(jnp.float32), ref4, atol=3e-2, rtol=3e-2), \
        "mismatch (bf16)"

    print("KERNEL_OK")
</pallas_src>

<mosaic_0001>
module attributes {stable_mosaic.version = 11 : i64} {
  func.func @_simam_kernel(%arg0: i32, %arg1: memref<8x256xf32, #tpu.memory_space<vmem>>, %arg2: memref<8x256xf32, #tpu.memory_space<vmem>>) attributes {dimension_semantics = [#tpu.dimension_semantics<parallel>], iteration_bounds = array<i64: 1>, scalar_prefetch = 0 : i64, scratch_operands = 0 : i64, tpu.core_type = #tpu.core_type<tc>, window_params = [{transform_indices = @transform_0, window_bounds = array<i64: 8, 256>}, {transform_indices = @transform_1, window_bounds = array<i64: 8, 256>}]} {
    %c0 = arith.constant 0 : index
    %c0_0 = arith.constant 0 : index
    %0 = vector.load %arg1[%c0, %c0_0] : memref<8x256xf32, #tpu.memory_space<vmem>>, vector<8x256xf32>
    %cst = arith.constant dense<0.000000e+00> : vector<8xf32>
    %1 = vector.multi_reduction <add>, %0, %cst [1] : vector<8x256xf32> to vector<8xf32>
    %2 = vector.shape_cast %1 : vector<8xf32> to vector<8x1xf32>
    %cst_1 = arith.constant 3.906250e-03 : f32
    %3 = vector.broadcast %cst_1 : f32 to vector<8x1xf32>
    %4 = arith.mulf %2, %3 : vector<8x1xf32>
    %5 = vector.broadcast %4 : vector<8x1xf32> to vector<8x256xf32>
    %6 = arith.subf %0, %5 : vector<8x256xf32>
    %7 = arith.mulf %6, %6 : vector<8x256xf32>
    %cst_2 = arith.constant dense<0.000000e+00> : vector<8xf32>
    %8 = vector.multi_reduction <add>, %7, %cst_2 [1] : vector<8x256xf32> to vector<8xf32>
    %9 = vector.shape_cast %8 : vector<8xf32> to vector<8x1xf32>
    %cst_3 = arith.constant 0.00392156886 : f32
    %10 = vector.broadcast %cst_3 : f32 to vector<8x1xf32>
    %11 = arith.mulf %9, %10 : vector<8x1xf32>
    %cst_4 = arith.constant 9.99999974E-5 : f32
    %12 = vector.broadcast %cst_4 : f32 to vector<8x1xf32>
    %13 = arith.addf %11, %12 : vector<8x1xf32>
    %cst_5 = arith.constant 4.000000e+00 : f32
    %14 = vector.broadcast %cst_5 : f32 to vector<8x1xf32>
    %15 = arith.mulf %14, %13 : vector<8x1xf32>
    %16 = tpu.reciprocal %15 : vector<8x1xf32> -> vector<8x1xf32>
    %17 = vector.broadcast %16 : vector<8x1xf32> to vector<8x256xf32>
    %18 = arith.mulf %7, %17 : vector<8x256xf32>
    %cst_6 = arith.constant 5.000000e-01 : f32
    %19 = vector.broadcast %cst_6 : f32 to vector<8x256xf32>
    %20 = arith.addf %18, %19 : vector<8x256xf32>
    %21 = arith.negf %20 : vector<8x256xf32>
    %22 = math.exp %21 : vector<8x256xf32>
    %cst_7 = arith.constant 1.000000e+00 : f32
    %23 = vector.broadcast %cst_7 : f32 to vector<8x256xf32>
    %24 = arith.addf %23, %22 : vector<8x256xf32>
    %25 = arith.divf %23, %24 : vector<8x256xf32>
    %26 = arith.mulf %0, %25 : vector<8x256xf32>
    %c0_8 = arith.constant 0 : index
    %c0_9 = arith.constant 0 : index
    %27 = vector.load %arg2[%c0_8, %c0_9] : memref<8x256xf32, #tpu.memory_space<vmem>>, vector<8x256xf32>
    tpu.vector_store %arg2[%c0_8, %c0_9], %26 {strides = array<i32>} : memref<8x256xf32, #tpu.memory_space<vmem>>, vector<8x256xf32>,
    return
  }
  func.func @transform_0(%arg0: i32) -> (i32, i32) {
    %c0_i32 = arith.constant 0 : i32
    %c0_i32_0 = arith.constant 0 : i32
    return %arg0, %c0_i32 : i32, i32
  }
  func.func @transform_1(%arg0: i32) -> (i32, i32) {
    %c0_i32 = arith.constant 0 : i32
    %c0_i32_0 = arith.constant 0 : i32
    return %arg0, %c0_i32 : i32, i32
  }
}

</mosaic_0001>

<bundles_post_ra>
// kernel: tpu_custom_call.1
= control target key start
LH: loop header
LB: loop body
LE: loop exit
PB: predicated region body
PF: predicated region fallthrough
CT: control target
= control target key end

     0   :  { %6 = vsyncpa [#allocation3], 0  ;;  %s171_s0 = inlined_call_operand.hbm [shape: f32[8,256], index: 0, kind: input, shape index: {}]   ;;  %s172_s1 = inlined_call_operand.hbm [shape: f32[8,256], index: 1, kind: output, shape index: {}]  }
   0x1   :  { %7 = vsyncpa [#allocation4], 0  ;;  %s135_s6 = smov [#allocation2]   ;;  %s87_s10 = scalar_lea.hbm %s171_s0, 256 }
   0x2   :  { %s14_s7 = sshll.u32 %s135_s6, 4  ;;  %p88_p0 = scmp.ne.s32.totalorder %s171_s0, %s87_s10  ;;  %s15_s7 = int_to_ptr.vmem [resolvable:$true] %s14_s7 }
   0x3   :  { %p91_p1 = scmp.lt.u32.totalorder %s87_s10, %s171_s0 }
   0x5   :  { %p93_p2 = pnand %p91_p1, %p88_p0 }
   0x7   :  { %96 = shalt.err (!%p93_p2)
}
   0x8   :  { %s97_s15 = scalar_lea.vmem %s15_s7, 256  ;;  %p102_p4 = scmp.lt.s32.totalorder %s15_s7, %s15_s7 }
   0x9   :  { %p98_p3 = scmp.ne.s32.totalorder %s15_s7, %s97_s15  ;;  %p103_p5 = scmp.lt.s32.totalorder %s97_s15, %s97_s15 }
   0xb   :  { %p104_p6 = por %p103_p5, %p102_p4 }
   0xd   :  { %p105_p7 = pnand %p104_p6, %p98_p3 }
   0xf   :  { %108 = shalt.err (!%p105_p7)
}
  0x10   :  { %17 = dma.hbm_to_vmem [thread:$0]  %s171_s0, 256, %s15_s7, [#allocation3]  }
  0x11   :  { %131 = dma.done.wait [#allocation3], 256  }
  0x12   :  { %132 = vsyncadd [#allocation3], 4294967040  ;;  %v21_v0 = vld [vmem:[#allocation2] sm:$0xff]  ;;  %v22_v1 = vld [vmem:[#allocation2 + $0x8] sm:$0xff]  ;;  %s136_s0 = smov [#allocation5]  }
  0x13   :  { %v23_v2 = vadd.f32 %v22_v1, %v21_v0  ;;  %s64_s18 = sshll.u32 %s136_s0, 4  ;;  %s65_s18 = int_to_ptr.vmem [resolvable:$true] %s64_s18 }
  0x14   :  { %s109_s19 = scalar_lea.vmem %s65_s18, 256  ;;  %p114_p9 = scmp.lt.s32.totalorder %s65_s18, %s65_s18 }
  0x15   :  { %24 = vadd.xlane.f32.xlu0 %v23_v2  ;;  %p110_p8 = scmp.ne.s32.totalorder %s65_s18, %s109_s19  ;;  %p115_p10 = scmp.lt.s32.totalorder %s109_s19, %s109_s19 }
  0x17   :  { %p116_p11 = por %p115_p10, %p114_p9 }
  0x19   :  { %p117_p12 = pnand %p116_p11, %p110_p8 }
  0xa2   :  { %v25_v3 = vpop.xlane.xlu0 %24 }
  0xa3   :  { %v26_v4 = vmul.f32 0.00390625, %v25_v3 }
  0xa5   :  { %v27_v5 = vsub.f32 %v21_v0, %v26_v4  ;;  %v28_v6 = vsub.f32 %v22_v1, %v26_v4 }
  0xa7   :  { %v29_v7 = vmul.f32 %v27_v5, %v27_v5  ;;  %v30_v8 = vmul.f32 %v28_v6, %v28_v6 }
  0xa9   :  { %v31_v9 = vadd.f32 %v30_v8, %v29_v7 }
  0xab   :  { %32 = vadd.xlane.f32.xlu0 %v31_v9 }
 0x138   :  { %v33_v10 = vpop.xlane.xlu0 %32 }
 0x139   :  { %v34_v11 = vmul.f32 0.003921569, %v33_v10 }
 0x13b   :  { %v35_v12 = vadd.f32 0.0001, %v34_v11 }
 0x13d   :  { %v36_v13 = vmul.f32 4.0, %v35_v12 }
 0x13f   :  { %77 = vrcp.f32 %v36_v13 }
 0x149   :  { %v78_v14 = vpop.eup %77 }
 0x14a   :  { %v38_v15 = vmul.f32 %v78_v14, %v29_v7  ;;  %v39_v16 = vmul.f32 %v78_v14, %v30_v8 }
 0x14c   :  { %v40_v17 = vadd.f32 0.5, %v38_v15  ;;  %v41_v18 = vadd.f32 0.5, %v39_v16 }
 0x14e   :  { %v73_v19 = vmul.f32 -1.442695, %v40_v17  ;;  %v74_v20 = vmul.f32 -1.442695, %v41_v18 }
 0x150   :  { %79 = vpow2.f32 %v73_v19 }
 0x151   :  { %81 = vpow2.f32 %v74_v20 }
 0x15a   :  { %v80_v21 = vpop.eup %79 }
 0x15b   :  { %v82_v22 = vpop.eup %81  ;;  %v48_v23 = vadd.f32 1.0, %v80_v21 }
 0x15c   :  { %v49_v24 = vadd.f32 1.0, %v82_v22 }
 0x15d   :  { %83 = vrcp.f32 %v48_v23 }
 0x15e   :  { %85 = vrcp.f32 %v49_v24 }
 0x167   :  { %v84_v25 = vpop.eup %83 }
 0x168   :  { %v86_v26 = vpop.eup %85  ;;  %v54_v27 = vmul.f32 %v84_v25, %v21_v0 }
 0x169   :  { %v55_v28 = vmul.f32 %v86_v26, %v22_v1 }
 0x16a   :  { %56 = vst [vmem:[#allocation5] sm:$0xff] %v54_v27 }
 0x16b   :  { %57 = vst [vmem:[#allocation5 + $0x8] sm:$0xff] %v55_v28 }
 0x16c   :  { %120 = shalt.err (!%p117_p12)
}
 0x16d   :  { %s121_s22 = scalar_lea.hbm %s172_s1, 256 }
 0x16e   :  { %p122_p13 = scmp.ne.s32.totalorder %s172_s1, %s121_s22  ;;  %p125_p0 = scmp.lt.u32.totalorder %s121_s22, %s172_s1 }
 0x170   :  { %p127_p1 = pnand %p125_p0, %p122_p13 }
 0x172   :  { %130 = shalt.err (!%p127_p1)
}
 0x173   :  { %67 = dma.vmem_to_hbm [thread:$0]  %s65_s18, 256, %s172_s1, [#allocation4]  }
 0x174   :  { %133 = dma.done.wait [#allocation4], 256  }
 0x175   :  { %134 = vsyncadd [#allocation4], 4294967040 }
 0x176   :  { %71 = vsyncpa [#allocation3], 1 }
 0x177   :  { %72 = vsyncpa [#allocation4], 1 }

</bundles_post_ra>
